<compile_context>
chip_gen: v7x
topology: tpu7x:2x2x1
jax: 0.10.0
libtpu: 0.0.40
codegen_flags: <defaults>
</compile_context>

<pallas_src>
import jax
import jax.numpy as jnp
from jax import lax
from jax.experimental import pallas as pl
from jax.experimental.pallas import tpu as pltpu
import numpy as np

EPS = 1e-3
EPS2 = EPS * EPS
GAUSS_K = (0.05, 0.25, 0.4, 0.25, 0.05)


# ------------------------------ operator setup ------------------------------
def _conv_matrix(n, k):
    """Matrix A with (A @ v)[i] = sum_t k[t] * v[clamp(i + t - 2, 0, n-1)]
    (5-tap gaussian along one axis with replicate padding)."""
    A = np.zeros((n, n), np.float32)
    for i in range(n):
        for t in range(5):
            j = min(max(i + t - 2, 0), n - 1)
            A[i, j] += k[t]
    return A


def _edge_operators(H, W):
    """Composite operators BH (H,H), BWT (W,W) such that, per 2-D plane d:
         laplacian(d) = d - BH @ d @ BWT
    (blur -> even-mask*4 -> blur folded into two matmuls).  Returned in bf16:
    MXU default precision rounds f32 operands to bf16 anyway, and bf16 halves
    the resident operator footprint and the operand traffic feeding the MXU."""
    k = np.asarray(GAUSS_K, np.float32)
    AH = _conv_matrix(H, k)                       # H-axis (row) blur
    AW = _conv_matrix(W, k)                       # W-axis (col) blur
    eh = (np.arange(H) % 2 == 0).astype(np.float32)
    ew = (np.arange(W) % 2 == 0).astype(np.float32)
    BH = 4.0 * (AH * eh[None, :]) @ AH            # 4 * AH @ diag(eh) @ AH
    BWT = (AW.T * ew[None, :]) @ AW.T             # AW^T @ diag(ew) @ AW^T
    return jnp.asarray(BH, jnp.bfloat16), jnp.asarray(BWT, jnp.bfloat16)


# ------------------------------ block planning ------------------------------
def _vmem_capacity_bytes():
    try:
        info = pltpu.get_tpu_info()
        for name in ("vmem_capacity_bytes", "vmem_size_bytes"):
            cap = getattr(info, name, None)
            if cap:
                return int(cap)
    except Exception:
        pass
    return 64 * 1024 * 1024                       # conservative (v7x-sized) fallback


def _plan_blocks(n_planes, H, W, itemsize):
    """Choose planes-per-block P, grid length n_steps and plane padding so that
    the double-buffered input blocks + in-kernel temporaries + operators fit a
    generation-aware VMEM budget, and n_steps >= 2 so megacore can split the
    parallel grid axis."""
    cap = _vmem_capacity_bytes()
    budget = int(cap * 0.55)                      # chooser budget
    vmem_limit = int(cap * 0.70)                  # Mosaic scoped-VMEM limit

    plane = H * W
    per_plane_in = 2 * 2 * plane * itemsize       # x,y blocks, double-buffered
    per_plane_tmp = 20 * plane + 2 * H * H        # d/g1/g2/lap f32 + bf16 copies + BH bcast
    mat_bytes = 2 * 2 * (H * H + W * W)           # bf16 BH/BWT, double-buffered
    out_bytes = 2 * 8 * 128 * 4

    avail = budget - mat_bytes - out_bytes
    cap_p = max(1, avail // (per_plane_in + per_plane_tmp))

    min_steps = 2 if n_planes >= 2 else 1         # >=2 steps -> both TCs usable
    n_steps = max(min_steps, -(-n_planes // cap_p))
    P = -(-n_planes // n_steps)
    n_steps = max(min_steps, -(-n_planes // P))
    pad = n_steps * P - n_planes
    return int(P), int(n_steps), int(pad), int(vmem_limit)


# --------------------------------- kernel -----------------------------------
def _fsformer_kernel(x_ref, y_ref, bh_ref, bwt_ref, out_ref):
    P, H, W = x_ref.shape

    # Block-wide difference (f32) and Charbonnier partial sum (single pass).
    d = x_ref[...].astype(jnp.float32) - y_ref[...].astype(jnp.float32)
    char_part = jnp.sum(jnp.sqrt(d * d + EPS2))

    # Edge branch: lap(x) - lap(y) == lap(d) = d - BH @ d @ BWT, batched over
    # the whole block.
    #   g1 = d @ BWT   : one (P*H, W) x (W, W) MXU matmul (large M dim)
    #   g2 = BH @ g1   : batched (P, H, H) x (P, H, W) matmul (BH broadcast)
    d_flat_b = d.reshape(P * H, W).astype(jnp.bfloat16)
    g1 = jnp.dot(d_flat_b, bwt_ref[...],
                 preferred_element_type=jnp.float32).reshape(P, H, W)
    bh_b = jnp.broadcast_to(bh_ref[...], (P, H, H))
    g2 = lax.dot_general(bh_b, g1.astype(jnp.bfloat16),
                         dimension_numbers=(((2,), (1,)), ((0,), (0,))),
                         preferred_element_type=jnp.float32)
    lap = d - g2
    edge_part = jnp.sum(jnp.sqrt(lap * lap + EPS2))

    # Lane-dense (8,128) full-tile store: row 0 = char partial, row 1 = edge.
    row = lax.broadcasted_iota(jnp.int32, (8, 128), 0)
    tile = jnp.where(row == 0, char_part,
                     jnp.where(row == 1, edge_part, jnp.float32(0.0)))
    out_ref[0] = tile.astype(jnp.float32)


# --------------------------------- wrapper ----------------------------------
def fsformer_loss(restore, sharp, blur=None):
    """FSformer_Loss.forward.  `blur` accepted for API parity but unused."""
    B, C, H, W = restore.shape
    n_planes = B * C
    x = restore.reshape(n_planes, H, W)           # native dtype; cast in-kernel
    y = sharp.reshape(n_planes, H, W)

    bh, bwt = _edge_operators(H, W)
    itemsize = jnp.dtype(x.dtype).itemsize
    P, n_steps, pad, vmem_limit = _plan_blocks(n_planes, H, W, itemsize)

    if pad:
        zeros = jnp.zeros((pad, H, W), x.dtype)
        x = jnp.concatenate([x, zeros], axis=0)
        y = jnp.concatenate([y, zeros], axis=0)

    parts = pl.pallas_call(
        _fsformer_kernel,
        out_shape=jax.ShapeDtypeStruct((n_steps, 8, 128), jnp.float32),
        grid=(n_steps,),
        in_specs=[
            pl.BlockSpec((P, H, W), lambda i: (i, 0, 0)),
            pl.BlockSpec((P, H, W), lambda i: (i, 0, 0)),
            pl.BlockSpec((H, H), lambda i: (0, 0)),
            pl.BlockSpec((W, W), lambda i: (0, 0)),
        ],
        out_specs=pl.BlockSpec((1, 8, 128), lambda i: (i, 0, 0)),
        compiler_params=pltpu.CompilerParams(
            dimension_semantics=("parallel",),    # independent steps -> megacore
            vmem_limit_bytes=vmem_limit,
        ),
    )(x, y, bh, bwt)

    # Padded zero planes contribute exactly sqrt(eps^2) per element to both
    # partial sums; subtract that analytically and normalize by real elements.
    pad_corr = jnp.float32(pad * H * W) * jnp.sqrt(jnp.float32(EPS2))
    n_elems = jnp.float32(n_planes * H * W)
    char = (jnp.sum(parts[:, 0, 0]) - pad_corr) / n_elems
    edge = (jnp.sum(parts[:, 1, 0]) - pad_corr) / n_elems
    return char + 0.05 * edge


# ---------------- pure-JAX reference (for verification only) ----------------
def _ref_conv_gauss(img, k2d):
    p = jnp.pad(img, ((0, 0), (2, 2), (2, 2)), mode="edge")
    H, W = img.shape[1], img.shape[2]
    out = jnp.zeros_like(img)
    for u in range(5):
        for v in range(5):
            out = out + k2d[u, v] * p[:, u:u + H, v:v + W]
    return out


def _ref_laplacian(img, k2d):
    f = _ref_conv_gauss(img, k2d)
    nf = jnp.zeros_like(f)
    nf = nf.at[:, ::2, ::2].set(f[:, ::2, ::2] * 4.0)
    f2 = _ref_conv_gauss(nf, k2d)
    return img - f2


def _ref_loss(restore, sharp):
    B, C, H, W = restore.shape
    d = restore.astype(jnp.float32) - sharp.astype(jnp.float32)
    char = jnp.mean(jnp.sqrt(d * d + EPS2))
    k = jnp.array(GAUSS_K, jnp.float32)
    k2d = jnp.outer(k, k)
    x = restore.reshape(B * C, H, W).astype(jnp.float32)
    y = sharp.reshape(B * C, H, W).astype(jnp.float32)
    de = _ref_laplacian(x, k2d) - _ref_laplacian(y, k2d)
    edge = jnp.mean(jnp.sqrt(de * de + EPS2))
    return char + 0.05 * edge


if __name__ == "__main__":
    key = jax.random.PRNGKey(0)
    k1, k2, k3 = jax.random.split(key, 3)
    B, C, H, W = 2, 3, 16, 16          # NCHW; C=3 matches EdgeLoss' 3-ch kernel
    restore = jax.random.uniform(k1, (B, C, H, W), jnp.float32)
    sharp = jax.random.uniform(k2, (B, C, H, W), jnp.float32)
    blur = jax.random.uniform(k3, (B, C, H, W), jnp.float32)   # unused in fwd

    loss_fn = jax.jit(fsformer_loss)
    loss = jax.block_until_ready(loss_fn(restore, sharp, blur))

    ref = jax.block_until_ready(_ref_loss(restore, sharp))
    # Tolerance covers bf16 MXU operands on the 0.05-weighted edge branch
    # (matches default TPU matmul precision); structural errors would be
    # orders of magnitude larger.
    np.testing.assert_allclose(np.asarray(loss), np.asarray(ref),
                               rtol=2e-3, atol=2e-4)
    print("KERNEL_OK")
</pallas_src>

<mosaic_0001>
module attributes {stable_mosaic.version = 11 : i64} {
  func.func @_fsformer_kernel(%arg0: i32, %arg1: memref<3x16x16xf32, #tpu.memory_space<vmem>>, %arg2: memref<3x16x16xf32, #tpu.memory_space<vmem>>, %arg3: memref<16x16xbf16, #tpu.memory_space<vmem>>, %arg4: memref<16x16xbf16, #tpu.memory_space<vmem>>, %arg5: memref<1x8x128xf32, #tpu.memory_space<vmem>>) attributes {dimension_semantics = [#tpu.dimension_semantics<parallel>], iteration_bounds = array<i64: 2>, scalar_prefetch = 0 : i64, scratch_operands = 0 : i64, tpu.core_type = #tpu.core_type<tc>, window_params = [{transform_indices = @transform_0, window_bounds = array<i64: 3, 16, 16>}, {transform_indices = @transform_1, window_bounds = array<i64: 3, 16, 16>}, {pipeline_mode = #tpu.pipeline_mode<synchronous>, transform_indices = @transform_2, window_bounds = array<i64: 16, 16>}, {pipeline_mode = #tpu.pipeline_mode<synchronous>, transform_indices = @transform_3, window_bounds = array<i64: 16, 16>}, {transform_indices = @transform_4, window_bounds = array<i64: 1, 8, 128>}]} {
    %c0 = arith.constant 0 : index
    %c0_0 = arith.constant 0 : index
    %c0_1 = arith.constant 0 : index
    %0 = vector.load %arg1[%c0, %c0_0, %c0_1] : memref<3x16x16xf32, #tpu.memory_space<vmem>>, vector<3x16x16xf32>
    %c0_2 = arith.constant 0 : index
    %c0_3 = arith.constant 0 : index
    %c0_4 = arith.constant 0 : index
    %1 = vector.load %arg2[%c0_2, %c0_3, %c0_4] : memref<3x16x16xf32, #tpu.memory_space<vmem>>, vector<3x16x16xf32>
    %2 = arith.subf %0, %1 : vector<3x16x16xf32>
    %3 = arith.mulf %2, %2 : vector<3x16x16xf32>
    %cst = arith.constant 9.99999997E-7 : f32
    %4 = vector.broadcast %cst : f32 to vector<3x16x16xf32>
    %5 = arith.addf %3, %4 : vector<3x16x16xf32>
    %6 = math.sqrt %5 : vector<3x16x16xf32>
    %7 = vector.shape_cast %6 : vector<3x16x16xf32> to vector<1x3x16x16xf32>
    %cst_5 = arith.constant dense<0.000000e+00> : vector<1xf32>
    %8 = vector.multi_reduction <add>, %7, %cst_5 [1, 2, 3] : vector<1x3x16x16xf32> to vector<1xf32>
    %9 = vector.shape_cast %8 : vector<1xf32> to vector<1x1x1x1xf32>
    %10 = vector.extract %9[0, 0, 0, 0] : f32 from vector<1x1x1x1xf32>
    %11 = vector.shape_cast %2 : vector<3x16x16xf32> to vector<48x16xf32>
    %12 = arith.truncf %11 : vector<48x16xf32> to vector<48x16xbf16>
    %c0_6 = arith.constant 0 : index
    %c0_7 = arith.constant 0 : index
    %13 = vector.load %arg4[%c0_6, %c0_7] : memref<16x16xbf16, #tpu.memory_space<vmem>>, vector<16x16xbf16>
    %cst_8 = arith.constant dense<0.000000e+00> : vector<48x16xf32>
    %14 = tpu.matmul %12, %13, %cst_8 {dimension_numbers = #tpu.dot_dimension_numbers<[1], [0], [0], [1], [0, 0, 1, 1], [], []>} : vector<48x16xbf16>, vector<16x16xbf16>, vector<48x16xf32> -> vector<48x16xf32>
    %15 = vector.shape_cast %14 : vector<48x16xf32> to vector<3x16x16xf32>
    %c0_9 = arith.constant 0 : index
    %c0_10 = arith.constant 0 : index
    %16 = vector.load %arg3[%c0_9, %c0_10] : memref<16x16xbf16, #tpu.memory_space<vmem>>, vector<16x16xbf16>
    %17 = vector.shape_cast %16 : vector<16x16xbf16> to vector<1x16x16xbf16>
    %18 = vector.broadcast %17 : vector<1x16x16xbf16> to vector<3x16x16xbf16>
    %19 = arith.truncf %15 : vector<3x16x16xf32> to vector<3x16x16xbf16>
    %cst_11 = arith.constant dense<0.000000e+00> : vector<3x16x16xf32>
    %20 = tpu.matmul %18, %19, %cst_11 {dimension_numbers = #tpu.dot_dimension_numbers<[2], [1], [1], [2], [0, 0, 0, 1, 1, 2], [0], [0]>} : vector<3x16x16xbf16>, vector<3x16x16xbf16>, vector<3x16x16xf32> -> vector<3x16x16xf32>
    %21 = arith.subf %2, %20 : vector<3x16x16xf32>
    %22 = arith.mulf %21, %21 : vector<3x16x16xf32>
    %cst_12 = arith.constant 9.99999997E-7 : f32
    %23 = vector.broadcast %cst_12 : f32 to vector<3x16x16xf32>
    %24 = arith.addf %22, %23 : vector<3x16x16xf32>
    %25 = math.sqrt %24 : vector<3x16x16xf32>
    %26 = vector.shape_cast %25 : vector<3x16x16xf32> to vector<1x3x16x16xf32>
    %cst_13 = arith.constant dense<0.000000e+00> : vector<1xf32>
    %27 = vector.multi_reduction <add>, %26, %cst_13 [1, 2, 3] : vector<1x3x16x16xf32> to vector<1xf32>
    %28 = vector.shape_cast %27 : vector<1xf32> to vector<1x1x1x1xf32>
    %29 = vector.extract %28[0, 0, 0, 0] : f32 from vector<1x1x1x1xf32>
    %30 = tpu.iota {dimensions = array<i32: 0>} : vector<8x128xi32>
    %c0_i32 = arith.constant 0 : i32
    %31 = vector.broadcast %c0_i32 : i32 to vector<8x128xi32>
    %32 = arith.cmpi eq, %30, %31 : vector<8x128xi32>
    %c1_i32 = arith.constant 1 : i32
    %33 = vector.broadcast %c1_i32 : i32 to vector<8x128xi32>
    %34 = arith.cmpi eq, %30, %33 : vector<8x128xi32>
    %cst_14 = arith.constant 0.000000e+00 : f32
    %35 = vector.broadcast %29 : f32 to vector<8x128xf32>
    %36 = vector.broadcast %cst_14 : f32 to vector<8x128xf32>
    %37 = arith.select %34, %35, %36 : vector<8x128xi1>, vector<8x128xf32>
    %38 = vector.broadcast %10 : f32 to vector<8x128xf32>
    %39 = arith.select %32, %38, %37 : vector<8x128xi1>, vector<8x128xf32>
    %c0_15 = arith.constant 0 : index
    %c0_16 = arith.constant 0 : index
    %c0_17 = arith.constant 0 : index
    %40 = vector.load %arg5[%c0_15, %c0_16, %c0_17] : memref<1x8x128xf32, #tpu.memory_space<vmem>>, vector<1x8x128xf32>
    %41 = vector.shape_cast %40 : vector<1x8x128xf32> to vector<8x128xf32>
    %42 = vector.shape_cast %39 : vector<8x128xf32> to vector<1x8x128xf32>
    tpu.vector_store %arg5[%c0_15, %c0_16, %c0_17], %42 {strides = array<i32>} : memref<1x8x128xf32, #tpu.memory_space<vmem>>, vector<1x8x128xf32>,
    return
  }
  func.func @transform_0(%arg0: i32) -> (i32, i32, i32) {
    %c0_i32 = arith.constant 0 : i32
    %c0_i32_0 = arith.constant 0 : i32
    %c0_i32_1 = arith.constant 0 : i32
    return %arg0, %c0_i32, %c0_i32_0 : i32, i32, i32
  }
  func.func @transform_1(%arg0: i32) -> (i32, i32, i32) {
    %c0_i32 = arith.constant 0 : i32
    %c0_i32_0 = arith.constant 0 : i32
    %c0_i32_1 = arith.constant 0 : i32
    return %arg0, %c0_i32, %c0_i32_0 : i32, i32, i32
  }
  func.func @transform_2(%arg0: i32) -> (i32, i32) {
    %c0_i32 = arith.constant 0 : i32
    %c0_i32_0 = arith.constant 0 : i32
    %c0_i32_1 = arith.constant 0 : i32
    return %c0_i32, %c0_i32_0 : i32, i32
  }
  func.func @transform_3(%arg0: i32) -> (i32, i32) {
    %c0_i32 = arith.constant 0 : i32
    %c0_i32_0 = arith.constant 0 : i32
    %c0_i32_1 = arith.constant 0 : i32
    return %c0_i32, %c0_i32_0 : i32, i32
  }
  func.func @transform_4(%arg0: i32) -> (i32, i32, i32) {
    %c0_i32 = arith.constant 0 : i32
    %c0_i32_0 = arith.constant 0 : i32
    %c0_i32_1 = arith.constant 0 : i32
    return %arg0, %c0_i32, %c0_i32_0 : i32, i32, i32
  }
}

</mosaic_0001>

<bundles_post_ra>
// kernel: fsformer_loss.1
= control target key start
LH: loop header
LB: loop body
LE: loop exit
PB: predicated region body
PF: predicated region fallthrough
CT: control target
= control target key end

     0   :  { %9 = vsyncpa [#allocation3], 0  ;;  %s1273_s0 = inlined_call_operand.hbm [shape: f32[6,16,16], index: 0, kind: input, shape index: {}]   ;;  %s1274_s1 = inlined_call_operand.hbm [shape: f32[6,16,16], index: 1, kind: input, shape index: {}]   ;;  %s1275_s2 = inlined_call_operand.vmem [shape: bf16[16,16], index: 2, kind: input, shape index: {}]   ;;  %s1276_s3 = inlined_call_operand.vmem [shape: bf16[16,16], index: 3, kind: input, shape index: {}]   ;;  %s1277_s4 = inlined_call_operand.vmem [shape: f32[2,8,128], index: 4, kind: output, shape index: {}]  }
   0x1   :  { %11 = vsyncpa [#allocation3 + $0x1], 0 }
   0x2   :  { %12 = vsyncpa [#allocation5], 0 }
   0x3   :  { %14 = vsyncpa [#allocation5 + $0x1], 0  ;;  %s1023_s15 = smov 0   ;;  %s1025_s16 = smov 0  }
   0x4   :  { %s1027_s17 = smov 0   ;;  %s1029_s18 = smov 0  }
   0x5 LB: > { %s1042_s19 = sadd.s32 4294967295, %s990_s18   ;;  %s1045_s20 = sadd.s32 1, %s990_s18   ;;  %s990_s18 = sphi %s1029_s18, %s1287_s18   ;;  %s986_s17 = sphi %s1027_s17, %s1286_s17   ;;  %s982_s16 = sphi %s1025_s16, %s1285_s16   ;;  %s978_s15 = sphi %s1023_s15, %s1284_s15  }
   0x6   : > { %s24_s21 = ssub.s32 %s990_s18, %s1045_s20  ;;  %s27_s22 = sadd.s32 1, %s986_s17 }
   0x7   : > { %p25_p0 = scmp.eq.s32.totalorder %s24_s21, 0  ;;  %p34_p1 = scmp.ne.s32.totalorder %s986_s17, %s982_s16 }
   0x8   : > { %p35_p2 = scmp.eq.s32.totalorder %s990_s18, 0  ;;  %p40_p3 = scmp.ne.s32.totalorder %s982_s16, %s978_s15 }
   0x9   : > { %s1055_s23 = scalar_select %p25_p0, %s986_s17, %s27_s22  }
   0xa   : > { %p36_p4 = por %p35_p2, %p34_p1  ;;  %p41_p5 = scmp.eq.s32.totalorder %s1042_s19, 0 }
   0xb   : > { %p829_p6 = scmp.lt.s32.totalorder %s990_s18, 2  ;;  %s1064_s25 = sand.u32 1, %s986_s17  }
   0xc   : > { %p1059_p7 = por %p41_p5, %p40_p3  ;;  %s811_s26 = smul.u32 48, %s1064_s25 }
   0xd   : > { %s767_s27 = smul.u32 768, %s990_s18  ;;  %p1068_p8 = pnand %p829_p6, %p36_p4 }
   0xe   : > { %s1279_s24 = scalar_select %p1059_p7, 1, 0 }
   0xf   : > { %s1077_s5 = scalar_lea.hbm %s1273_s0, %s767_s27  ;;  %s168_s6 = scalar_lea.vmem [#allocation2], %s811_s26 }
  0x10   : > { %s176_s7 = sshll.u32 %s168_s6, 4  ;;  %s165_s8 = scalar_lea.sflag [#allocation3], %s1064_s25  ;;  %s1081_s7 = int_to_ptr.vmem [resolvable:$true] %s176_s7 }
  0x11   : > { %s892_s9 = scalar_lea.hbm %s1077_s5, 768  ;;  %p894_p11 = pneg %p1068_p8 }
  0x12   : > { %p893_p10 = scmp.ne.s32.totalorder %s1077_s5, %s892_s9  ;;  %s897_s12 = scalar_lea.hbm %s1273_s0, 1536 }
  0x13   : > { %p898_p0 = scmp.lt.u32.totalorder %s1077_s5, %s1273_s0  ;;  %p899_p1 = scmp.lt.u32.totalorder %s897_s12, %s892_s9 }
  0x14   : > { %p895_p12 = pnand %p894_p11, %p893_p10  ;;  %p901_p3 = scmp.lt.u32.totalorder %s892_s9, %s1077_s5 }
  0x15   : > { %p900_p2 = por %p899_p1, %p898_p0 }
  0x16   : > { %p896_p13 = pneg %p895_p12 }
  0x17   : > { %p902_p4 = por %p901_p3, %p900_p2 }
  0x19   : > { %p903_p5 = pnand %p902_p4, %p896_p13 }
  0x1b   : > { %906 = shalt.err (!%p903_p5)
}
  0x1c   : > { %s907_s15 = scalar_lea.vmem %s1081_s7, 768  ;;  %s992_s21 = smov [#allocation2]  }
  0x1d   : > { %p908_p6 = scmp.ne.s32.totalorder %s1081_s7, %s907_s15  ;;  %s912_s22 = sshll.u32 %s992_s21, 4  ;;  %s913_s22 = int_to_ptr.vmem [resolvable:$false] %s912_s22 }
  0x1e   : > { %s914_s29 = scalar_lea.vmem %s913_s22, 1536  ;;  %p915_p9 = scmp.lt.s32.totalorder %s1081_s7, %s913_s22 }
  0x1f   : > { %p910_p10 = pnand %p908_p6, %p894_p11  ;;  %p916_p0 = scmp.lt.s32.totalorder %s914_s29, %s907_s15 }
  0x21   : > { %p911_p12 = pneg %p910_p10  ;;  %p917_p1 = por %p916_p0, %p915_p9 }
  0x23   : > { %p918_p2 = pnand %p917_p1, %p911_p12 }
  0x25   : > { %921 = shalt.err (!%p918_p2)
}
  0x26   : > { %s993_s30 = smov 128   ;;  %s994_s6 = smov 8  }
  0x27   : > { %825 = dma.hbm_to_vmem [thread:$0]  (!%p1068_p8), %s1077_s5, 768, %s1081_s7, %s165_s8, %s993_s30, %s993_s30, %s994_s6  }
  0x28   : > { %p206_p9 = scmp.lt.s32.totalorder %s990_s18, 3  ;;  %s1121_s11 = scalar_lea.hbm %s1274_s1, %s767_s27 }
  0x29   : > { %p1281_p13 = scmp.ge.s32.totalorder %s990_s18, 1  ;;  %s190_s13 = scalar_lea.vmem [#allocation4], %s811_s26 }
  0x2a   : > { %s198_s14 = sshll.u32 %s190_s13, 4  ;;  %s187_s5 = scalar_lea.sflag [#allocation5], %s1064_s25  ;;  %s1131_s14 = int_to_ptr.vmem [resolvable:$true] %s198_s14 }
  0x2b   : > { %p1125_p3 = pnand %p1281_p13, %p206_p9  ;;  %s922_s7 = scalar_lea.hbm %s1121_s11, 768 }
  0x2c   : > { %p923_p4 = scmp.ne.s32.totalorder %s1121_s11, %s922_s7  ;;  %s927_s8 = scalar_lea.hbm %s1274_s1, 1536 }
  0x2d   : > { %p928_p10 = scmp.lt.u32.totalorder %s1121_s11, %s1274_s1  ;;  %p929_p12 = scmp.lt.u32.totalorder %s927_s8, %s922_s7 }
  0x2e   : > { %p925_p5 = pnand %p923_p4, %p894_p11  ;;  %p931_p1 = scmp.lt.u32.totalorder %s922_s7, %s1121_s11 }
  0x2f   : > { %p930_p0 = por %p929_p12, %p928_p10 }
  0x30   : > { %p926_p6 = pneg %p925_p5 }
  0x31   : > { %p932_p2 = por %p931_p1, %p930_p0 }
  0x33   : > { %p933_p9 = pnand %p932_p2, %p926_p6 }
  0x35   : > { %936 = shalt.err (!%p933_p9)
}
  0x36   : > { %s937_s26 = scalar_lea.vmem %s1131_s14, 768  ;;  %s995_s22 = smov [#allocation4]  }
  0x37   : > { %p938_p13 = scmp.ne.s32.totalorder %s1131_s14, %s937_s26  ;;  %s942_s29 = sshll.u32 %s995_s22, 4  ;;  %s943_s29 = int_to_ptr.vmem [resolvable:$false] %s942_s29 }
  0x38   : > { %s944_s9 = scalar_lea.vmem %s943_s29, 1536  ;;  %p945_p7 = scmp.lt.s32.totalorder %s1131_s14, %s943_s29 }
  0x39   : > { %p940_p4 = pnand %p938_p13, %p894_p11  ;;  %p946_p10 = scmp.lt.s32.totalorder %s944_s9, %s937_s26 }
  0x3b   : > { %p941_p5 = pneg %p940_p4  ;;  %p947_p12 = por %p946_p10, %p945_p7 }
  0x3d   : > { %p948_p0 = pnand %p947_p12, %p941_p5 }
  0x3f   : > { %951 = shalt.err (!%p948_p0)
}
  0x40   : > { %828 = dma.hbm_to_vmem [thread:$0]  (!%p1068_p8), %s1121_s11, 768, %s1131_s14, %s187_s5, %s993_s30, %s993_s30, %s994_s6  }
  0x41   : > { %210 = sbr.rel (%p1125_p3) target bundleno = 763 (0x2fb), region = 36  ;;  %s212_s10 = sand.u32 (!%p1125_p3), 1, %s982_s16  }
  0x42   : > { %s813_s13 = smul.u32 (!%p1125_p3), 48, %s212_s10  ;;  %s213_s7 = scalar_lea.sflag (!%p1125_p3), [#allocation3], %s212_s10 }
  0x43   : > { %p1283_p7 = scmp.ne.s32.totalorder (!%p1125_p3), %s1279_s24, 0 }
  0x44   : > { %s1165_s18 = scalar_lea.vmem (!%p1125_p3), [#allocation2], %s813_s13 }
  0x48   : > { %969 = dma.done.wait (%p1283_p7), %s213_s7, 768  }
  0x49   : > { %971 = vsyncadd (%p1283_p7), %s213_s7, 4294966528  ;;  %s222_s25 = scalar_lea.sflag [#allocation5], %s212_s10  ;;  %s1171_s28 = scalar_lea.vmem [#allocation4], %s813_s13 }
  0x4a   : > { %973 = dma.done.wait (%p1283_p7), %s222_s25, 768  }
  0x4b   : > { %975 = vsyncadd (%p1283_p7), %s222_s25, 4294966528  ;;  %v996_v0 = vmov 0.0   ;;  %vm997_vm0 = vmmov 0   ;;  %v866_v1 = vld [vmem:[%s1276_s3] sm:$0xff]   ;;  %v262_v3 = vld [vmem:[%s1165_s18 + $0x8] sm:$0xff]  ;;  %vm333_vm1 = vcmask 130048  }
  0x4c   : > { %779 = vmatprep.subr.bf16.mxu0 %v996_v0  ;;  %781 = vmatprep.mubr.msk.bf16.mxu0 %vm997_vm0, %v996_v0  ;;  %v261_v2 = vld [vmem:[%s1165_s18] sm:$0xff]  ;;  %v268_v5 = vld [vmem:[%s1171_s28 + $0x8] sm:$0xff]  ;;  %v263_v8 = vld [vmem:[%s1165_s18 + $0x10] sm:$0xff]  ;;  %p256_p8 = scmp.lt.s32.totalorder %s1042_s19, 1 }
  0x4d   : > { %793 = vmatprep.subr.bf16.mxu1 %v996_v0  ;;  %795 = vmatprep.mubr.msk.bf16.mxu1 %vm997_vm0, %v996_v0  ;;  %v267_v4 = vld [vmem:[%s1171_s28] sm:$0xff]  ;;  %v1188_v7 = vsub.f32 %v262_v3, %v268_v5  ;;  %v264_v9 = vld [vmem:[%s1165_s18 + $0x18] sm:$0xff]  ;;  %v269_v10 = vld [vmem:[%s1171_s28 + $0x10] sm:$0xff] }
  0x4e   : > { %780 = vmatpush3.bf16.msra.mxu0 %v866_v1  ;;  %v1186_v6 = vsub.f32 %v261_v2, %v267_v4  ;;  %v270_v11 = vld [vmem:[%s1171_s28 + $0x18] sm:$0xff]  ;;  %v1197_v13 = vsub.f32 %v263_v8, %v269_v10  ;;  %v265_v16 = vld [vmem:[%s1165_s18 + $0x20] sm:$0xff]  ;;  %v266_v17 = vld [vmem:[%s1165_s18 + $0x28] sm:$0xff]  ;;  %s1289_s19 = smov (!%p256_p8, %s1042_s19), 1 }
  0x4f   : > { %v1199_v14 = vsub.f32 %v264_v9, %v270_v11  ;;  %v271_v18 = vld [vmem:[%s1171_s28 + $0x20] sm:$0xff]  ;;  %v272_v19 = vld [vmem:[%s1171_s28 + $0x28] sm:$0xff]  ;;  %v280_v40 = vmul.f32 %v1188_v7, %v1188_v7  ;;  %s752_s12 = sshll.u32 %s1289_s19, 3 }
  0x50   : > { %v354_v12 = vpack.c.bf16 %v1188_v7, %v1186_v6  ;;  %v1209_v20 = vsub.f32 %v265_v16, %v271_v18  ;;  %v1211_v21 = vsub.f32 %v266_v17, %v272_v19  ;;  %v867_v28 = vld [vmem:[%s1275_s2] sm:$0xff]   ;;  %v279_v39 = vmul.f32 %v1186_v6, %v1186_v6  ;;  %s259_s15 = scalar_lea.vmem %s1277_s4, %s752_s12 }
  0x51   : > { %v355_v15 = vpack.c.bf16 %v1199_v14, %v1197_v13  ;;  %v281_v41 = vmul.f32 %v1197_v13, %v1197_v13  ;;  %v282_v43 = vmul.f32 %v1199_v14, %v1199_v14  ;;  %v286_v44 = vadd.f32 1e-06, %v280_v40 }
  0x52   : > { %782 = vmatmul.mubr.msk.bf16.vlgmr.msra.gmra.mrb[0].mxu0 %vm333_vm1, %v354_v12  ;;  %v356_v22 = vpack.c.bf16 %v1211_v21, %v1209_v20  ;;  %v285_v42 = vadd.f32 1e-06, %v279_v39  ;;  %v283_v46 = vmul.f32 %v1209_v20, %v1209_v20  ;;  %v284_v48 = vmul.f32 %v1211_v21, %v1211_v21 }
  0x53   : > { %785 = vmatprep.mubr.msk.bf16.mxu0 %vm997_vm0, %v996_v0  ;;  %v287_v45 = vadd.f32 1e-06, %v281_v41  ;;  %v288_v47 = vadd.f32 1e-06, %v282_v43  ;;  %vm300_vm3 = vcmp.eq.f32.partialorder %v286_v44, inf  ;;  %vm302_vm5 = vcmp.eq.f32.partialorder %v286_v44, 0.0 }
  0x54   : > { %868 = vrsqrt.f32 %v285_v42  ;;  %v289_v49 = vadd.f32 1e-06, %v283_v46  ;;  %v290_v50 = vadd.f32 1e-06, %v284_v48  ;;  %vm293_vm2 = vcmp.eq.f32.partialorder %v285_v42, inf }
  0x55   : > { %870 = vrsqrt.f32 %v286_v44  ;;  %v296_v55 = vand.u32 2147483648, %v285_v42  ;;  %vm295_vm4 = vcmp.eq.f32.partialorder %v285_v42, 0.0  ;;  %v303_v58 = vand.u32 2147483648, %v286_v44 }
  0x56   : > { %872 = vrsqrt.f32 %v287_v45  ;;  %vm307_vm6 = vcmp.eq.f32.partialorder %v287_v45, inf  ;;  %vm309_vm7 = vcmp.eq.f32.partialorder %v287_v45, 0.0  ;;  %v310_v63 = vand.u32 2147483648, %v287_v45 }
  0x57   : > { %874 = vrsqrt.f32 %v288_v47  ;;  %vm314_vm8 = vcmp.eq.f32.partialorder %v288_v47, inf  ;;  %v317_v4 = vand.u32 2147483648, %v288_v47  ;;  %vm316_vm9 = vcmp.eq.f32.partialorder %v288_v47, 0.0 }
  0x58   : > { %876 = vrsqrt.f32 %v289_v49  ;;  %vm321_vm10 = vcmp.eq.f32.partialorder %v289_v49, inf  ;;  %vm323_vm11 = vcmp.eq.f32.partialorder %v289_v49, 0.0  ;;  %v324_v11 = vand.u32 2147483648, %v289_v49 }
  0x59   : > { %878 = vrsqrt.f32 %v290_v50  ;;  %vm328_vm12 = vcmp.eq.f32.partialorder %v290_v50, inf  ;;  %vm330_vm13 = vcmp.eq.f32.partialorder %v290_v50, 0.0  ;;  %v331_v18 = vand.u32 2147483648, %v290_v50 }
  0x5a   : > { %786 = vmatmul.mubr.msk.bf16.gmra.mrb[4].mxu0 %vm333_vm1, %v355_v15 }
  0x5b   : > { %789 = vmatprep.mubr.msk.bf16.mxu0 %vm997_vm0, %v996_v0 }
  0x5e   : > { %v869_v51 = vpop.eup %868 }
  0x5f   : > { %v871_v52 = vpop.eup %870  ;;  %v292_v53 = vmul.f32 %v869_v51, %v285_v42 }
  0x60   : > { %v873_v54 = vpop.eup %872  ;;  %v299_v56 = vmul.f32 %v871_v52, %v286_v44 }
  0x61   : > { %v294_v57 = vsel %vm293_vm2, %v285_v42, %v292_v53  ;;  %v875_v59 = vpop.eup %874  ;;  %v306_v61 = vmul.f32 %v873_v54, %v287_v45 }
  0x62   : > { %790 = vmatmul.mubr.msk.bf16.gmra.mrb[8].mxu0 %vm333_vm1, %v356_v22  ;;  %v301_v60 = vsel %vm300_vm3, %v286_v44, %v299_v56  ;;  %v297_v62 = vsel %vm295_vm4, %v296_v55, %v294_v57  ;;  %v877_v1 = vpop.eup %876 }
  0x63   : > { %v304_v2 = vsel %vm302_vm5, %v303_v58, %v301_v60  ;;  %v308_v3 = vsel %vm307_vm6, %v287_v45, %v306_v61  ;;  %v320_v9 = vmul.f32 %v877_v1, %v289_v49  ;;  %v879_v10 = vpop.eup %878  ;;  %v334_v12 = vsel %vm333_vm1, %v297_v62, 0.0 }
  0x64   : > { %v311_v5 = vsel %vm309_vm7, %v310_v63, %v308_v3  ;;  %v327_v17 = vmul.f32 %v879_v10, %v290_v50  ;;  %v335_v19 = vsel %vm333_vm1, %v304_v2, 0.0 }
  0x65   : > { %v322_v16 = vsel %vm321_vm10, %v289_v49, %v320_v9  ;;  %v337_v22 = vsel %vm333_vm1, %v311_v5, 0.0 }
 0x125   : > { %v408_v23 = vpop.f32.mrb[0].mxu0 }
 0x126   : > { %v783_v24 = vpop.f32.mrb[1].mxu0 }
 0x127   : > { %v411_v25 = vpop.f32.mrb[2].mxu0  ;;  %v329_v24 = vsel %vm328_vm12, %v290_v50, %v327_v17 }
 0x128   : > { %v433_v26 = vpack.c.bf16 %v411_v25, %v408_v23  ;;  %v784_v27 = vpop.f32.mrb[3].mxu0  ;;  %v325_v23 = vsel %vm323_vm11, %v324_v11, %v322_v16  ;;  %v336_v25 = vadd.f32 %v335_v19, %v334_v12 }
 0x129   : > { %v332_v27 = vsel %vm330_vm13, %v331_v18, %v329_v24 }
 0x12a   : > { %794 = vmatpush3.bf16.msra.mxu1 %v433_v26 }
 0x12b   : > { %799 = vmatprep.subr.bf16.mxu1 %v996_v0 }
 0x12d   : > { %v416_v29 = vpop.f32.mrb[4].mxu0  ;;  %796 = vmatmul.mubr.msk.bf16.vlgmr.msra.gmra.mrb[0].mxu1 %vm333_vm1, %v867_v28 }
 0x12e   : > { %v787_v30 = vpop.f32.mrb[5].mxu0  ;;  %801 = vmatprep.mubr.msk.bf16.mxu1 %vm997_vm0, %v996_v0 }
 0x12f   : > { %v419_v31 = vpop.f32.mrb[6].mxu0 }
 0x130   : > { %v434_v32 = vpack.c.bf16 %v419_v31, %v416_v29  ;;  %v788_v33 = vpop.f32.mrb[7].mxu0  ;;  %v341_v29 = vsel %vm333_vm1, %v325_v23, 0.0  ;;  %v343_v31 = vsel %vm333_vm1, %v332_v27, 0.0 }
 0x132   : > { %800 = vmatpush3.bf16.msra.mxu1 %v434_v32 }
 0x133   : > { %805 = vmatprep.subr.bf16.mxu1 %v996_v0 }
 0x135   : > { %v424_v34 = vpop.f32.mrb[8].mxu0  ;;  %802 = vmatmul.mubr.msk.bf16.vlgmr.msra.gmra.mrb[4].mxu1 %vm333_vm1, %v867_v28 }
 0x136   : > { %v791_v35 = vpop.f32.mrb[9].mxu0  ;;  %807 = vmatprep.mubr.msk.bf16.mxu1 %vm997_vm0, %v996_v0  ;;  %v313_v0 = vmul.f32 %v875_v59, %v288_v47 }
 0x137   : > { %v427_v36 = vpop.f32.mrb[10].mxu0 }
 0x138   : > { %v435_v37 = vpack.c.bf16 %v427_v36, %v424_v34  ;;  %v792_v38 = vpop.f32.mrb[11].mxu0  ;;  %v315_v8 = vsel %vm314_vm8, %v288_v47, %v313_v0 }
 0x139   : > { %v318_v15 = vsel %vm316_vm9, %v317_v4, %v315_v8 }
 0x13a   : > { %806 = vmatpush3.bf16.msra.mxu1 %v435_v37  ;;  %v339_v26 = vsel %vm333_vm1, %v318_v15, 0.0 }
 0x13d   : > { %808 = vmatmul.mubr.msk.bf16.vlgmr.msra.gmra.mrb[8].mxu1 %vm333_vm1, %v867_v28  ;;  %v338_v28 = vadd.f32 %v337_v22, %v336_v25 }
 0x13f   : > { %v340_v30 = vadd.f32 %v339_v26, %v338_v28 }
 0x141   : > { %v342_v32 = vadd.f32 %v341_v29, %v340_v30 }
 0x143   : > { %v344_v33 = vadd.f32 %v343_v31, %v342_v32 }
 0x145   : > { %345 = vadd.xlane.f32.xlu0 %v344_v33 }
 0x200   : > { %v478_v34 = vpop.f32.mrb[0].mxu1 }
 0x201   : > { %v567_v35 = vsub.f32 %v1186_v6, %v478_v34  ;;  %v797_v36 = vpop.f32.mrb[1].mxu1 }
 0x202   : > { %v481_v37 = vpop.f32.mrb[2].mxu1 }
 0x203   : > { %v573_v38 = vmul.f32 %v567_v35, %v567_v35  ;;  %v568_v39 = vsub.f32 %v1188_v7, %v481_v37  ;;  %v798_v40 = vpop.f32.mrb[3].mxu1 }
 0x205   : > { %v579_v41 = vadd.f32 1e-06, %v573_v38  ;;  %v574_v42 = vmul.f32 %v568_v39, %v568_v39 }
 0x207   : > { %880 = vrsqrt.f32 %v579_v41  ;;  %v580_v43 = vadd.f32 1e-06, %v574_v42  ;;  %vm587_vm14 = vcmp.eq.f32.partialorder %v579_v41, inf  ;;  %vm589_vm15 = vcmp.eq.f32.partialorder %v579_v41, 0.0 }
 0x208   : > { %v519_v44 = vpop.f32.mrb[4].mxu1  ;;  %v590_v61 = vand.u32 2147483648, %v579_v41 }
 0x209   : > { %882 = vrsqrt.f32 %v580_v43  ;;  %v569_v45 = vsub.f32 %v1197_v13, %v519_v44  ;;  %v803_v46 = vpop.f32.mrb[5].mxu1  ;;  %vm594_vm0 = vcmp.eq.f32.partialorder %v580_v43, inf  ;;  %v597_v1 = vand.u32 2147483648, %v580_v43 }
 0x20a   : > { %v522_v47 = vpop.f32.mrb[6].mxu1  ;;  %vm596_vm2 = vcmp.eq.f32.partialorder %v580_v43, 0.0 }
 0x20b   : > { %v575_v48 = vmul.f32 %v569_v45, %v569_v45  ;;  %v570_v49 = vsub.f32 %v1199_v14, %v522_v47  ;;  %v804_v6 = vpop.f32.mrb[7].mxu1 }
 0x20d   : > { %v581_v50 = vadd.f32 1e-06, %v575_v48  ;;  %v576_v51 = vmul.f32 %v570_v49, %v570_v49 }
 0x20f   : > { %884 = vrsqrt.f32 %v581_v50  ;;  %v582_v52 = vadd.f32 1e-06, %v576_v51  ;;  %vm601_vm3 = vcmp.eq.f32.partialorder %v581_v50, inf  ;;  %v604_v12 = vand.u32 2147483648, %v581_v50 }
 0x210   : > { %v560_v7 = vpop.f32.mrb[8].mxu1  ;;  %vm603_vm4 = vcmp.eq.f32.partialorder %v581_v50, 0.0 }
 0x211   : > { %v881_v53 = vpop.eup %880  ;;  %886 = vrsqrt.f32 %v582_v52  ;;  %v571_v54 = vsub.f32 %v1209_v20, %v560_v7  ;;  %v809_v55 = vpop.f32.mrb[9].mxu1  ;;  %vm608_vm5 = vcmp.eq.f32.partialorder %v582_v52, inf  ;;  %v611_v18 = vand.u32 2147483648, %v582_v52 }
 0x212   : > { %v563_v56 = vpop.f32.mrb[10].mxu1  ;;  %v586_v57 = vmul.f32 %v881_v53, %v579_v41  ;;  %vm610_vm6 = vcmp.eq.f32.partialorder %v582_v52, 0.0  ;;  %v647_v53 = vlaneseq }
 0x213   : > { %v883_v58 = vpop.eup %882  ;;  %v577_v13 = vmul.f32 %v571_v54, %v571_v54  ;;  %v572_v59 = vsub.f32 %v1211_v21, %v563_v56  ;;  %v810_v60 = vpop.f32.mrb[11].mxu1 }
 0x214   : > { %v588_v14 = vsel %vm587_vm14, %v579_v41, %v586_v57  ;;  %v593_v62 = vmul.f32 %v883_v58, %v580_v43  ;;  %v346_v41 = vpop.xlane.xlu0 %345  ;;  %v648_v54 = vshrl.u32 %v647_v53, 7 }
 0x215   : > { %v583_v63 = vadd.f32 1e-06, %v577_v13  ;;  %v578_v0 = vmul.f32 %v572_v59, %v572_v59  ;;  %v591_v2 = vsel %vm589_vm15, %v590_v61, %v588_v14  ;;  %v347_v42 = vrot.slane %v346_v41, 4 }
 0x216   : > { %v595_v3 = vsel %vm594_vm0, %v580_v43, %v593_v62  ;;  %v627_v21 = vsel %vm333_vm1, %v591_v2, 0.0  ;;  %vm649_vm11 = vcmp.eq.s32.totalorder %v648_v54, 0 }
 0x217   : > { %888 = vrsqrt.f32 %v583_v63  ;;  %v584_v20 = vadd.f32 1e-06, %v578_v0  ;;  %v598_v4 = vsel %vm596_vm2, %v597_v1, %v595_v3  ;;  %vm615_vm7 = vcmp.eq.f32.partialorder %v583_v63, inf }
 0x218   : > { %v628_v5 = vsel %vm333_vm1, %v598_v4, 0.0  ;;  %v618_v30 = vand.u32 2147483648, %v583_v63  ;;  %vm617_vm8 = vcmp.eq.f32.partialorder %v583_v63, 0.0  ;;  %v348_v43 = vadd.f32 %v347_v42, %v346_v41 }
 0x219   : > { %v885_v8 = vpop.eup %884  ;;  %890 = vrsqrt.f32 %v584_v20  ;;  %v629_v10 = vadd.f32 %v628_v5, %v627_v21  ;;  %vm622_vm9 = vcmp.eq.f32.partialorder %v584_v20, inf  ;;  %v625_v34 = vand.u32 2147483648, %v584_v20 }
 0x21a   : > { %v600_v9 = vmul.f32 %v885_v8, %v581_v50  ;;  %vm624_vm10 = vcmp.eq.f32.partialorder %v584_v20, 0.0  ;;  %v349_v44 = vrot.slane %v348_v43, 2 }
 0x21b   : > { %v887_v11 = vpop.eup %886 }
 0x21c   : > { %v602_v15 = vsel %vm601_vm3, %v581_v50, %v600_v9  ;;  %v607_v16 = vmul.f32 %v887_v11, %v582_v52  ;;  %v350_v45 = vadd.f32 %v349_v44, %v348_v43 }
 0x21d   : > { %v605_v17 = vsel %vm603_vm4, %v604_v12, %v602_v15 }
 0x21e   : > { %v609_v19 = vsel %vm608_vm5, %v582_v52, %v607_v16  ;;  %v630_v22 = vsel %vm333_vm1, %v605_v17, 0.0  ;;  %v351_v46 = vrot.slane %v350_v45, 1 }
 0x21f   : > { %v612_v23 = vsel %vm610_vm6, %v611_v18, %v609_v19  ;;  %v631_v24 = vadd.f32 %v630_v22, %v629_v10 }
 0x220   : > { %v632_v25 = vsel %vm333_vm1, %v612_v23, 0.0  ;;  %v352_v47 = vadd.f32 %v351_v46, %v350_v45 }
 0x221   : > { %v889_v26 = vpop.eup %888  ;;  %v633_v27 = vadd.f32 %v632_v25, %v631_v24 }
 0x222   : > { %v614_v28 = vmul.f32 %v889_v26, %v583_v63  ;;  %814 = vpush %v352_v47 }
 0x223   : > { %v891_v29 = vpop.eup %890 }
 0x224   : > { %v616_v31 = vsel %vm615_vm7, %v583_v63, %v614_v28  ;;  %v621_v32 = vmul.f32 %v891_v29, %v584_v20 }
 0x225   : > { %v619_v33 = vsel %vm617_vm8, %v618_v30, %v616_v31 }
 0x226   : > { %v623_v35 = vsel %vm622_vm9, %v584_v20, %v621_v32  ;;  %v634_v36 = vsel %vm333_vm1, %v619_v33, 0.0 }
 0x227   : > { %v626_v37 = vsel %vm624_vm10, %v625_v34, %v623_v35  ;;  %v635_v38 = vadd.f32 %v634_v36, %v633_v27 }
 0x228   : > { %v636_v39 = vsel %vm333_vm1, %v626_v37, 0.0  ;;  %vm650_vm1 = vcmp.eq.s32.totalorder %v648_v54, 1 }
 0x229   : > { %v637_v40 = vadd.f32 %v636_v39, %v635_v38 }
 0x22b   : > { %638 = vadd.xlane.f32.xlu0 %v637_v40 }
 0x253   : > { %s815_s14 = spop %814 }
 0x254   : > { %v653_v56 = vstv %s815_s14 }
 0x2b8   : > { %v639_v48 = vpop.xlane.xlu0 %638 }
 0x2b9   : > { %v640_v49 = vrot.slane %v639_v48, 4 }
 0x2bb   : > { %v641_v6 = vadd.f32 %v640_v49, %v639_v48 }
 0x2bd   : > { %v642_v50 = vrot.slane %v641_v6, 2 }
 0x2bf   : > { %v643_v51 = vadd.f32 %v642_v50, %v641_v6 }
 0x2c1   : > { %v644_v52 = vrot.slane %v643_v51, 1 }
 0x2c3   : > { %v645_v7 = vadd.f32 %v644_v52, %v643_v51 }
 0x2c5   : > { %816 = vpush %v645_v7 }
 0x2f6   : > { %s817_s5 = spop %816 }
 0x2f7   : > { %v651_v55 = vstv %s817_s5 }
 0x2f8   : > { %v652_v57 = vsel %vm650_vm1, %v651_v55, 0.0 }
 0x2f9   : > { %v654_v58 = vsel %vm649_vm11, %v653_v56, %v652_v57 }
 0x2fa   : > { %655 = vst [vmem:[%s259_s15] sm:$0xff] %v654_v58 }
 0x2fb PF: > { %p17_p11 = scmp.ge.s32.totalorder %s1045_s20, 4   ;;  %s1284_s15 = smov %s982_s16 }
 0x2fc   : > { %s1285_s16 = smov %s986_s17  ;;  %s1286_s17 = smov %s1055_s23 }
 0x2fd   : > { %s1287_s18 = smov %s1045_s20  ;;  %19 = sbr.rel (!%p17_p11) target bundleno = 5 (0x5), region = 89 }
 0x304   :  { %675 = vsyncpa [#allocation3], 1 }
 0x305   :  { %677 = vsyncpa [#allocation3 + $0x1], 1 }
 0x306   :  { %678 = vsyncpa [#allocation5], 1 }
 0x307   :  { %680 = vsyncpa [#allocation5 + $0x1], 1 }

</bundles_post_ra>
